<compile_context>
chip_gen: v7x
topology: tpu7x:2x2x1
jax: 0.10.0
libtpu: 0.0.40
codegen_flags: <defaults>
</compile_context>

<pallas_src>
import functools

import jax
import jax.numpy as jnp
from jax import lax
from jax.experimental import pallas as pl
from jax.experimental.pallas import tpu as pltpu


def _decoder_kernel(tgt_ref, enc_ref, emb_ref, w_ref, b_ref, out_ref):
    """One grid step == one row tile of TM rows (rows = flattened B*S).

    tgt_ref : (TM, 1)  int32  target token ids for this row tile
    enc_ref : (TM, D)  bf16   encoder outputs for this row tile
    emb_ref : (V, D)   bf16   embedding table (resident across the grid)
    w_ref   : (D, V)   bf16   output projection weight (resident)
    b_ref   : (1, V)   f32    output projection bias (resident)
    out_ref : (TM, V)  f32    predicted log-probs tile
    """
    tm = tgt_ref.shape[0]
    vocab = emb_ref.shape[0]

    # Fused embedding lookup: exact one-hot gather on the MXU.
    onehot = (tgt_ref[...] ==
              lax.broadcasted_iota(jnp.int32, (tm, vocab), 1)
              ).astype(jnp.bfloat16)                                   # (TM, V)
    emb_rows = jnp.dot(onehot, emb_ref[...],
                       preferred_element_type=jnp.float32)             # (TM, D) f32

    # Elementwise add in f32 (VPU), then bf16 operands back into the MXU.
    x = enc_ref[...].astype(jnp.float32) + emb_rows                    # (TM, D)
    logits = jnp.dot(x.astype(jnp.bfloat16), w_ref[...],
                     preferred_element_type=jnp.float32)               # (TM, V)
    logits = logits + b_ref[...]                                       # bias bcast

    # Numerically-stable log-softmax along the vocab (lane) axis, all in f32.
    m = jnp.max(logits, axis=-1, keepdims=True)
    z = logits - m
    lse = jnp.log(jnp.sum(jnp.exp(z), axis=-1, keepdims=True))
    out_ref[...] = (z - lse).astype(out_ref.dtype)


@functools.partial(jax.jit, static_argnames=("row_tile",))
def base_decoder_forward(targets, encoder_outputs, embedding, w_out, b_out,
                         row_tile: int = 128):
    """targets: int[B, S]; encoder_outputs: f32[B, S, D] -> f32[B, S, V].

    row_tile: rows (of the flattened B*S axis) handled per grid step.
    128 matches the v5e MXU height; 256 fills v6e/v7x.
    """
    B, S, D = encoder_outputs.shape
    V = w_out.shape[1]
    M = B * S

    # Fold batch & sequence into one row axis; pad rows to a multiple of the
    # row tile (padded rows use token id 0 and zero activations; discarded).
    m_pad = row_tile * pl.cdiv(M, row_tile)
    enc_flat = encoder_outputs.reshape(M, D).astype(jnp.bfloat16)
    enc_flat = jnp.pad(enc_flat, ((0, m_pad - M), (0, 0)))
    tgt_flat = targets.reshape(M, 1).astype(jnp.int32)
    tgt_flat = jnp.pad(tgt_flat, ((0, m_pad - M), (0, 0)))

    emb_bf16 = embedding.astype(jnp.bfloat16)        # (V, D), resident in VMEM
    w_bf16 = w_out.astype(jnp.bfloat16)              # (D, V), resident in VMEM
    b2d = b_out.reshape(1, V).astype(jnp.float32)

    grid_spec = pltpu.PrefetchScalarGridSpec(
        num_scalar_prefetch=0,
        grid=(m_pad // row_tile,),
        in_specs=[
            pl.BlockSpec((row_tile, 1), lambda i: (i, 0)),   # target ids
            pl.BlockSpec((row_tile, D), lambda i: (i, 0)),   # encoder rows
            pl.BlockSpec((V, D), lambda i: (0, 0)),          # embedding table
            pl.BlockSpec((D, V), lambda i: (0, 0)),          # projection weight
            pl.BlockSpec((1, V), lambda i: (0, 0)),          # projection bias
        ],
        out_specs=pl.BlockSpec((row_tile, V), lambda i: (i, 0)),
    )

    out_flat = pl.pallas_call(
        _decoder_kernel,
        out_shape=jax.ShapeDtypeStruct((m_pad, V), jnp.float32),
        grid_spec=grid_spec,
        compiler_params=pltpu.CompilerParams(
            dimension_semantics=("parallel",),
            vmem_limit_bytes=64 * 1024 * 1024,
        ),
    )(tgt_flat, enc_flat, emb_bf16, w_bf16, b2d)

    return out_flat[:M].reshape(B, S, V)


if __name__ == "__main__":
    # Small shapes consistent with the documented forward signature.
    B, S, D, V = 2, 8, 32, 128

    key = jax.random.PRNGKey(0)
    k_enc, k_tgt, k_emb, k_w, k_b = jax.random.split(key, 5)

    encoder_outputs = jax.random.normal(k_enc, (B, S, D), dtype=jnp.float32)
    targets = jax.random.randint(k_tgt, (B, S), minval=0, maxval=V,
                                 dtype=jnp.int32)

    # Deterministic synthetic parameters (no checkpoint loading).
    embedding = 0.02 * jax.random.normal(k_emb, (V, D), dtype=jnp.float32)
    w_out = 0.02 * jax.random.normal(k_w, (D, V), dtype=jnp.float32)
    b_out = jnp.zeros((V,), dtype=jnp.float32)

    log_probs = base_decoder_forward(targets, encoder_outputs,
                                     embedding, w_out, b_out)
    jax.block_until_ready(log_probs)

    # Sanity checks: shape and log-softmax normalization.
    assert log_probs.shape == (B, S, V)
    row_sums = jnp.sum(jnp.exp(log_probs), axis=-1)
    assert bool(jnp.all(jnp.abs(row_sums - 1.0) < 1e-3))

    print("KERNEL_OK")
</pallas_src>

<mosaic_0001>
module attributes {stable_mosaic.version = 11 : i64} {
  func.func @_decoder_kernel(%arg0: i32, %arg1: memref<128x1xi32, #tpu.memory_space<vmem>>, %arg2: memref<128x32xbf16, #tpu.memory_space<vmem>>, %arg3: memref<128x32xbf16, #tpu.memory_space<vmem>>, %arg4: memref<32x128xbf16, #tpu.memory_space<vmem>>, %arg5: memref<1x128xf32, #tpu.memory_space<vmem>>, %arg6: memref<128x128xf32, #tpu.memory_space<vmem>>) attributes {dimension_semantics = [#tpu.dimension_semantics<parallel>], iteration_bounds = array<i64: 1>, scalar_prefetch = 0 : i64, scratch_operands = 0 : i64, tpu.core_type = #tpu.core_type<tc>, window_params = [{transform_indices = @transform_0, window_bounds = array<i64: 128, 1>}, {transform_indices = @transform_1, window_bounds = array<i64: 128, 32>}, {pipeline_mode = #tpu.pipeline_mode<synchronous>, transform_indices = @transform_2, window_bounds = array<i64: 128, 32>}, {pipeline_mode = #tpu.pipeline_mode<synchronous>, transform_indices = @transform_3, window_bounds = array<i64: 32, 128>}, {pipeline_mode = #tpu.pipeline_mode<synchronous>, transform_indices = @transform_4, window_bounds = array<i64: 1, 128>}, {transform_indices = @transform_5, window_bounds = array<i64: 128, 128>}]} {
    %c0 = arith.constant 0 : index
    %c0_0 = arith.constant 0 : index
    %0 = vector.load %arg1[%c0, %c0_0] : memref<128x1xi32, #tpu.memory_space<vmem>>, vector<128x1xi32>
    %1 = tpu.iota {dimensions = array<i32: 1>} : vector<128x128xi32>
    %2 = vector.broadcast %0 : vector<128x1xi32> to vector<128x128xi32>
    %3 = arith.cmpi eq, %2, %1 : vector<128x128xi32>
    %4 = arith.extui %3 : vector<128x128xi1> to vector<128x128xi32>
    %5 = arith.sitofp %4 : vector<128x128xi32> to vector<128x128xf32>
    %6 = arith.truncf %5 : vector<128x128xf32> to vector<128x128xbf16>
    %c0_1 = arith.constant 0 : index
    %c0_2 = arith.constant 0 : index
    %7 = vector.load %arg3[%c0_1, %c0_2] : memref<128x32xbf16, #tpu.memory_space<vmem>>, vector<128x32xbf16>
    %cst = arith.constant dense<0.000000e+00> : vector<128x32xf32>
    %8 = tpu.matmul %6, %7, %cst {dimension_numbers = #tpu.dot_dimension_numbers<[1], [0], [0], [1], [0, 0, 1, 1], [], []>} : vector<128x128xbf16>, vector<128x32xbf16>, vector<128x32xf32> -> vector<128x32xf32>
    %c0_3 = arith.constant 0 : index
    %c0_4 = arith.constant 0 : index
    %9 = vector.load %arg2[%c0_3, %c0_4] : memref<128x32xbf16, #tpu.memory_space<vmem>>, vector<128x32xbf16>
    %10 = arith.extf %9 : vector<128x32xbf16> to vector<128x32xf32>
    %11 = arith.addf %10, %8 : vector<128x32xf32>
    %12 = arith.truncf %11 : vector<128x32xf32> to vector<128x32xbf16>
    %c0_5 = arith.constant 0 : index
    %c0_6 = arith.constant 0 : index
    %13 = vector.load %arg4[%c0_5, %c0_6] : memref<32x128xbf16, #tpu.memory_space<vmem>>, vector<32x128xbf16>
    %cst_7 = arith.constant dense<0.000000e+00> : vector<128x128xf32>
    %14 = tpu.matmul %12, %13, %cst_7 {dimension_numbers = #tpu.dot_dimension_numbers<[1], [0], [0], [1], [0, 0, 1, 1], [], []>} : vector<128x32xbf16>, vector<32x128xbf16>, vector<128x128xf32> -> vector<128x128xf32>
    %c0_8 = arith.constant 0 : index
    %c0_9 = arith.constant 0 : index
    %15 = vector.load %arg5[%c0_8, %c0_9] : memref<1x128xf32, #tpu.memory_space<vmem>>, vector<1x128xf32>
    %16 = vector.broadcast %15 : vector<1x128xf32> to vector<128x128xf32>
    %17 = arith.addf %14, %16 : vector<128x128xf32>
    %cst_10 = arith.constant dense<0xFF800000> : vector<128xf32>
    %18 = vector.multi_reduction <maximumf>, %17, %cst_10 [1] : vector<128x128xf32> to vector<128xf32>
    %19 = vector.shape_cast %18 : vector<128xf32> to vector<128x1xf32>
    %20 = vector.broadcast %19 : vector<128x1xf32> to vector<128x128xf32>
    %21 = arith.subf %17, %20 : vector<128x128xf32>
    %22 = math.exp %21 : vector<128x128xf32>
    %cst_11 = arith.constant dense<0.000000e+00> : vector<128xf32>
    %23 = vector.multi_reduction <add>, %22, %cst_11 [1] : vector<128x128xf32> to vector<128xf32>
    %24 = vector.shape_cast %23 : vector<128xf32> to vector<128x1xf32>
    %25 = math.log %24 : vector<128x1xf32>
    %26 = vector.broadcast %25 : vector<128x1xf32> to vector<128x128xf32>
    %27 = arith.subf %21, %26 : vector<128x128xf32>
    %c0_12 = arith.constant 0 : index
    %c0_13 = arith.constant 0 : index
    %28 = vector.load %arg6[%c0_12, %c0_13] : memref<128x128xf32, #tpu.memory_space<vmem>>, vector<128x128xf32>
    tpu.vector_store %arg6[%c0_12, %c0_13], %27 {strides = array<i32>} : memref<128x128xf32, #tpu.memory_space<vmem>>, vector<128x128xf32>,
    return
  }
  func.func @transform_0(%arg0: i32) -> (i32, i32) {
    %c0_i32 = arith.constant 0 : i32
    %c0_i32_0 = arith.constant 0 : i32
    return %arg0, %c0_i32 : i32, i32
  }
  func.func @transform_1(%arg0: i32) -> (i32, i32) {
    %c0_i32 = arith.constant 0 : i32
    %c0_i32_0 = arith.constant 0 : i32
    return %arg0, %c0_i32 : i32, i32
  }
  func.func @transform_2(%arg0: i32) -> (i32, i32) {
    %c0_i32 = arith.constant 0 : i32
    %c0_i32_0 = arith.constant 0 : i32
    %c0_i32_1 = arith.constant 0 : i32
    return %c0_i32, %c0_i32_0 : i32, i32
  }
  func.func @transform_3(%arg0: i32) -> (i32, i32) {
    %c0_i32 = arith.constant 0 : i32
    %c0_i32_0 = arith.constant 0 : i32
    %c0_i32_1 = arith.constant 0 : i32
    return %c0_i32, %c0_i32_0 : i32, i32
  }
  func.func @transform_4(%arg0: i32) -> (i32, i32) {
    %c0_i32 = arith.constant 0 : i32
    %c0_i32_0 = arith.constant 0 : i32
    %c0_i32_1 = arith.constant 0 : i32
    return %c0_i32, %c0_i32_0 : i32, i32
  }
  func.func @transform_5(%arg0: i32) -> (i32, i32) {
    %c0_i32 = arith.constant 0 : i32
    %c0_i32_0 = arith.constant 0 : i32
    return %arg0, %c0_i32 : i32, i32
  }
}

</mosaic_0001>

<bundles_post_ra>
// kernel: base_decoder_forward.1
= control target key start
LH: loop header
LB: loop body
LE: loop exit
PB: predicated region body
PF: predicated region fallthrough
CT: control target
= control target key end

     0   :  { %10 = vsyncpa [#allocation3], 0  ;;  %s1384_s0 = inlined_call_operand.hbm [shape: s32[128,1], index: 0, kind: input, shape index: {}]   ;;  %s1385_s1 = inlined_call_operand.hbm [shape: bf16[128,32], index: 1, kind: input, shape index: {}]   ;;  %s1386_s2 = inlined_call_operand.hbm [shape: bf16[128,32], index: 2, kind: input, shape index: {}]   ;;  %s1387_s3 = inlined_call_operand.hbm [shape: bf16[32,128], index: 3, kind: input, shape index: {}]   ;;  %s1388_s4 = inlined_call_operand.hbm [shape: f32[1,128], index: 4, kind: input, shape index: {}]   ;;  %s1389_s5 = inlined_call_operand.hbm [shape: f32[128,128], index: 5, kind: output, shape index: {}]  }
   0x1   :  { %11 = vsyncpa [#allocation6], 0 }
   0x2   :  { %12 = vsyncpa [#allocation9], 0 }
   0x3   :  { %13 = vsyncpa [#allocation4], 0  ;;  %s1163_s18 = smov [#allocation5]   ;;  %s1023_s22 = scalar_lea.hbm %s1385_s1, 1024 }
   0x4   :  { %s31_s19 = sshll.u32 %s1163_s18, 4  ;;  %p1024_p0 = scmp.ne.s32.totalorder %s1385_s1, %s1023_s22  ;;  %s32_s19 = int_to_ptr.vmem [resolvable:$true] %s31_s19 }
   0x5   :  { %p1027_p1 = scmp.lt.u32.totalorder %s1023_s22, %s1385_s1 }
   0x7   :  { %p1029_p2 = pnand %p1027_p1, %p1024_p0 }
   0x9   :  { %1032 = shalt.err (!%p1029_p2)
}
   0xa   :  { %s1033_s27 = scalar_lea.vmem %s32_s19, 1024  ;;  %p1038_p4 = scmp.lt.s32.totalorder %s32_s19, %s32_s19 }
   0xb   :  { %p1034_p3 = scmp.ne.s32.totalorder %s32_s19, %s1033_s27  ;;  %p1039_p5 = scmp.lt.s32.totalorder %s1033_s27, %s1033_s27 }
   0xd   :  { %p1040_p6 = por %p1039_p5, %p1038_p4 }
   0xf   :  { %p1041_p7 = pnand %p1040_p6, %p1034_p3 }
  0x11   :  { %1044 = shalt.err (!%p1041_p7)
}
  0x12   :  { %s1164_s28 = smov 64   ;;  %s1165_s29 = smov 4  }
  0x13   :  { %37 = dma.hbm_to_vmem [thread:$0]  %s1385_s1, 1024, %s32_s19, [#allocation6], %s1164_s28, %s1164_s28, %s1165_s29  }
  0x14   :  { %s1166_s7 = smov [#allocation8]   ;;  %s1167_s9 = smov [#allocation2]  }
  0x15   :  { %s55_s8 = sshll.u32 %s1166_s7, 4  ;;  %s19_s10 = sshll.u32 %s1167_s9, 4  ;;  %s56_s8 = int_to_ptr.vmem [resolvable:$true] %s55_s8  ;;  %s20_s10 = int_to_ptr.vmem [resolvable:$true] %s19_s10 }
  0x16   :  { %s1045_s13 = scalar_lea.hbm %s1387_s3, 256 }
  0x17   :  { %p1046_p8 = scmp.ne.s32.totalorder %s1387_s3, %s1045_s13  ;;  %p1049_p9 = scmp.lt.u32.totalorder %s1045_s13, %s1387_s3 }
  0x19   :  { %p1051_p10 = pnand %p1049_p9, %p1046_p8 }
  0x1b   :  { %1054 = shalt.err (!%p1051_p10)
}
  0x1c   :  { %s1055_s1 = scalar_lea.vmem %s56_s8, 256  ;;  %p1060_p12 = scmp.lt.s32.totalorder %s56_s8, %s56_s8 }
  0x1d   :  { %p1056_p11 = scmp.ne.s32.totalorder %s56_s8, %s1055_s1  ;;  %p1061_p13 = scmp.lt.s32.totalorder %s1055_s1, %s1055_s1 }
  0x1f   :  { %p1062_p0 = por %p1061_p13, %p1060_p12 }
  0x21   :  { %p1063_p1 = pnand %p1062_p0, %p1056_p11 }
  0x23   :  { %1066 = shalt.err (!%p1063_p1)
}
  0x24   :  { %61 = dma.hbm_to_vmem [thread:$0]  %s1387_s3, 256, %s56_s8, [#allocation9], %s1164_s28, %s1164_s28, %s1165_s29  }
  0x25   :  { %s1067_s22 = scalar_lea.hbm %s1384_s0, 2048 }
  0x26   :  { %p1068_p2 = scmp.ne.s32.totalorder %s1384_s0, %s1067_s22  ;;  %p1071_p3 = scmp.lt.u32.totalorder %s1067_s22, %s1384_s0 }
  0x28   :  { %p1073_p4 = pnand %p1071_p3, %p1068_p2 }
  0x2a   :  { %1076 = shalt.err (!%p1073_p4)
}
  0x2b   :  { %s1077_s27 = scalar_lea.vmem %s20_s10, 2048  ;;  %p1082_p6 = scmp.lt.s32.totalorder %s20_s10, %s20_s10 }
  0x2c   :  { %p1078_p5 = scmp.ne.s32.totalorder %s20_s10, %s1077_s27  ;;  %p1083_p7 = scmp.lt.s32.totalorder %s1077_s27, %s1077_s27 }
  0x2e   :  { %p1084_p8 = por %p1083_p7, %p1082_p6 }
  0x30   :  { %p1085_p9 = pnand %p1084_p8, %p1078_p5 }
  0x32   :  { %1088 = shalt.err (!%p1085_p9)
}
  0x33   :  { %s1168_s3 = smov 128   ;;  %s1169_s30 = smov 8  }
  0x34   :  { %25 = dma.hbm_to_vmem [thread:$0]  %s1384_s0, 2048, %s20_s10, [#allocation3], %s1168_s3, %s1168_s3, %s1169_s30  }
  0x35   :  { %s1170_s8 = smov [#allocation7]   ;;  %s1171_s11 = smov [#allocation10]  }
  0x36   :  { %s43_s9 = sshll.u32 %s1170_s8, 4  ;;  %s68_s12 = sshll.u32 %s1171_s11, 4  ;;  %s44_s9 = int_to_ptr.vmem [resolvable:$true] %s43_s9  ;;  %s69_s12 = int_to_ptr.vmem [resolvable:$true] %s68_s12 }
  0x37   :  { %s1089_s15 = scalar_lea.hbm %s1386_s2, 1024 }
  0x38   :  { %p1090_p10 = scmp.ne.s32.totalorder %s1386_s2, %s1089_s15  ;;  %p1093_p11 = scmp.lt.u32.totalorder %s1089_s15, %s1386_s2 }
  0x3a   :  { %p1095_p12 = pnand %p1093_p11, %p1090_p10 }
  0x3c   :  { %1098 = shalt.err (!%p1095_p12)
}
  0x3d   :  { %s1099_s0 = scalar_lea.vmem %s44_s9, 1024  ;;  %p1104_p0 = scmp.lt.s32.totalorder %s44_s9, %s44_s9 }
  0x3e   :  { %p1100_p13 = scmp.ne.s32.totalorder %s44_s9, %s1099_s0  ;;  %p1105_p1 = scmp.lt.s32.totalorder %s1099_s0, %s1099_s0 }
  0x40   :  { %p1106_p2 = por %p1105_p1, %p1104_p0 }
  0x42   :  { %p1107_p3 = pnand %p1106_p2, %p1100_p13 }
  0x44   :  { %1110 = shalt.err (!%p1107_p3)
}
  0x45   :  { %49 = dma.hbm_to_vmem [thread:$0]  %s1386_s2, 1024, %s44_s9, [#allocation6], %s1164_s28, %s1164_s28, %s1165_s29  }
  0x46   :  { %s1111_s22 = scalar_lea.hbm %s1388_s4, 16 }
  0x47   :  { %p1112_p4 = scmp.ne.s32.totalorder %s1388_s4, %s1111_s22  ;;  %p1115_p5 = scmp.lt.u32.totalorder %s1111_s22, %s1388_s4 }
  0x49   :  { %p1117_p6 = pnand %p1115_p5, %p1112_p4 }
  0x4b   :  { %1120 = shalt.err (!%p1117_p6)
}
  0x4c   :  { %s1121_s27 = scalar_lea.vmem %s69_s12, 16  ;;  %s1125_s6 = scalar_lea.vmem %s69_s12, 32 }
  0x4d   :  { %p1122_p7 = scmp.ne.s32.totalorder %s69_s12, %s1121_s27  ;;  %p1126_p8 = scmp.lt.s32.totalorder %s69_s12, %s69_s12 }
  0x4e   :  { %p1127_p9 = scmp.lt.s32.totalorder %s1125_s6, %s1121_s27 }
  0x50   :  { %p1128_p10 = por %p1127_p9, %p1126_p8 }
  0x52   :  { %p1129_p11 = pnand %p1128_p10, %p1122_p7 }
  0x54   :  { %1132 = shalt.err (!%p1129_p11)
}
  0x55   :  { %71 = dma.hbm_to_vmem [thread:$0]  %s1388_s4, 16, %s69_s12, [#allocation9]  }
  0x56   :  { %1155 = dma.done.wait [#allocation3], 2048  }
  0x57   :  { %1156 = vsyncadd [#allocation3], 4294965248 }
  0x58   :  { %1157 = dma.done.wait [#allocation6], 2048  }
  0x59   :  { %1158 = vsyncadd [#allocation6], 4294965248 }
  0x5a   :  { %1159 = dma.done.wait [#allocation9], 272  }
  0x5b   :  { %1160 = vsyncadd [#allocation9], 4294967024  ;;  %v1172_v0 = vmov 0   ;;  %v90_v1 = vld [vmem:[#allocation2 + $0x10] sm:$0xff]  ;;  %v88_v2 = vld [vmem:[#allocation2] sm:$0xff]  ;;  %v104_v25 = vlaneseq  ;;  %s1174_s4 = smov [#allocation11]  }
  0x5c   :  { %948 = vset.pattern.permute.xlu1 %v1172_v0  ;;  %947 = vset.pattern.permute.xlu0 %v1172_v0  ;;  %v91_v3 = vld [vmem:[#allocation2 + $0x18] sm:$0xff]  ;;  %v89_v4 = vld [vmem:[#allocation2 + $0x8] sm:$0xff]  ;;  %v92_v6 = vld [vmem:[#allocation2 + $0x20] sm:$0xff]  ;;  %v1173_v31 = vmov 1.0|1.0   ;;  %s753_s29 = sshll.u32 %s1174_s4, 4  ;;  %s754_s29 = int_to_ptr.vmem [resolvable:$true] %s753_s29 }
  0x5d   :  { %113 = vperm.xlu1 %948, %v90_v1   ;;  %107 = vperm.xlu0 %947, %v88_v2   ;;  %v93_v5 = vld [vmem:[#allocation2 + $0x28] sm:$0xff]  ;;  %v949_v7 = vld [vmem:[#allocation7] sm:$0xff]   ;;  %v95_v9 = vld [vmem:[#allocation2 + $0x38] sm:$0xff]  ;;  %v105_v28 = vand.u32 127, %v104_v25  ;;  %s1133_s7 = scalar_lea.vmem %s754_s29, 2048  ;;  %p1138_p13 = scmp.lt.s32.totalorder %s754_s29, %s754_s29 }
  0x5e   :  { %v950_v8 = vld [vmem:[#allocation7 + $0x8] sm:$0xff]   ;;  %883 = vmatprep.subr.bf16.mxu0 %v949_v7  ;;  %v94_v10 = vld [vmem:[#allocation2 + $0x30] sm:$0xff]  ;;  %v96_v13 = vld [vmem:[#allocation2 + $0x40] sm:$0xff]  ;;  %p1134_p12 = scmp.ne.s32.totalorder %s754_s29, %s1133_s7  ;;  %p1139_p0 = scmp.lt.s32.totalorder %s1133_s7, %s1133_s7 }
  0x5f   :  { %884 = vmatpush3.bf16.msra.mxu0 %v949_v7  ;;  %v951_v11 = vld [vmem:[#allocation7 + $0x10] sm:$0xff]   ;;  %v97_v12 = vld [vmem:[#allocation2 + $0x48] sm:$0xff]  ;;  %v952_v14 = vld [vmem:[#allocation7 + $0x18] sm:$0xff]  }
  0x60   :  { %885 = vmatprep.subr.bf16.mxu0 %v950_v8  ;;  %v99_v15 = vld [vmem:[#allocation2 + $0x58] sm:$0xff]  ;;  %v98_v16 = vld [vmem:[#allocation2 + $0x50] sm:$0xff]  ;;  %v953_v17 = vld [vmem:[#allocation7 + $0x20] sm:$0xff]   ;;  %p1140_p1 = por %p1139_p0, %p1138_p13 }
  0x61   :  { %116 = vperm.xlu1 %948, %v91_v3   ;;  %110 = vperm.xlu0 %947, %v89_v4   ;;  %v101_v18 = vld [vmem:[#allocation2 + $0x68] sm:$0xff]  ;;  %v100_v19 = vld [vmem:[#allocation2 + $0x60] sm:$0xff]  ;;  %v103_v21 = vld [vmem:[#allocation2 + $0x78] sm:$0xff] }
  0x62   :  { %v954_v20 = vld [vmem:[#allocation7 + $0x28] sm:$0xff]   ;;  %v102_v22 = vld [vmem:[#allocation2 + $0x70] sm:$0xff]  ;;  %v956_v24 = vld [vmem:[#allocation7 + $0x38] sm:$0xff]   ;;  %p1141_p2 = pnand %p1140_p1, %p1134_p12 }
  0x63   :  { %886 = vmatpush3.bf16.msra.mxu0 %v950_v8  ;;  %v955_v23 = vld [vmem:[#allocation7 + $0x30] sm:$0xff]   ;;  %v957_v44 = vld [vmem:[#allocation8] sm:$0xff]   ;;  %v958_v45 = vld [vmem:[#allocation8 + $0x8] sm:$0xff]  }
  0x64   :  { %887 = vmatprep.subr.bf16.mxu0 %v951_v11  ;;  %915 = vmatprep.subr.bf16.mxu1 %v957_v44  ;;  %v850_v46 = vld [vmem:[#allocation5 + $0x8] sm:$0xff]   ;;  %v819_v47 = vld [vmem:[#allocation5] sm:$0xff]   ;;  %v852_v60 = vld [vmem:[#allocation5 + $0x18] sm:$0xff]  }
  0x65   :  { %122 = vperm.xlu1 %948, %v93_v5   ;;  %119 = vperm.xlu0 %947, %v92_v6   ;;  %v824_v48 = vunpack.c.l.bf16 %v850_v46  ;;  %v825_v49 = vunpack.c.h.bf16 %v850_v46  ;;  %v820_v51 = vunpack.c.l.bf16 %v819_v47  ;;  %v821_v52 = vunpack.c.h.bf16 %v819_v47  ;;  %v851_v62 = vld [vmem:[#allocation5 + $0x10] sm:$0xff]  }
  0x66   :  { %916 = vmatpush3.bf16.msra.mxu1 %v957_v44  ;;  %v832_v0 = vunpack.c.l.bf16 %v852_v60  ;;  %v833_v1 = vunpack.c.h.bf16 %v852_v60  ;;  %v828_v3 = vunpack.c.l.bf16 %v851_v62  ;;  %v829_v4 = vunpack.c.h.bf16 %v851_v62  ;;  %v807_v46 = vld [vmem:[#allocation10] ss:$0 sm:$0xff] }
  0x67   :  { %888 = vmatpush3.bf16.msra.mxu0 %v951_v11  ;;  %917 = vmatprep.subr.bf16.mxu1 %v958_v45 }
  0x68   :  { %889 = vmatprep.subr.bf16.mxu0 %v952_v14 }
  0x69   :  { %128 = vperm.xlu1 %948, %v95_v9   ;;  %125 = vperm.xlu0 %947, %v94_v10  }
  0x6a   :  { %918 = vmatpush3.bf16.msra.mxu1 %v958_v45 }
  0x6b   :  { %890 = vmatpush3.bf16.msra.mxu0 %v952_v14  ;;  %v853_v14 = vld [vmem:[#allocation5 + $0x20] sm:$0xff]  }
  0x6c   :  { %891 = vmatprep.subr.bf16.mxu0 %v953_v17 }
  0x6d   :  { %134 = vperm.xlu1 %948, %v97_v12   ;;  %131 = vperm.xlu0 %947, %v96_v13   ;;  %v854_v12 = vld [vmem:[#allocation5 + $0x28] sm:$0xff]  }
  0x6f   :  { %892 = vmatpush3.bf16.msra.mxu0 %v953_v17  ;;  %v841_v17 = vunpack.c.h.bf16 %v854_v12 }
  0x70   :  { %893 = vmatprep.subr.bf16.mxu0 %v954_v20 }
  0x71   :  { %140 = vperm.xlu1 %948, %v99_v15   ;;  %137 = vperm.xlu0 %947, %v98_v16   ;;  %v840_v16 = vunpack.c.l.bf16 %v854_v12 }
  0x73   :  { %894 = vmatpush3.bf16.msra.mxu0 %v954_v20  ;;  %v837_v20 = vunpack.c.h.bf16 %v853_v14 }
  0x74   :  { %895 = vmatprep.subr.bf16.mxu0 %v955_v23 }
  0x75   :  { %146 = vperm.xlu1 %948, %v101_v18   ;;  %143 = vperm.xlu0 %947, %v100_v19   ;;  %v836_v19 = vunpack.c.l.bf16 %v853_v14 }
  0x77   :  { %896 = vmatpush3.bf16.msra.mxu0 %v955_v23 }
  0x78   :  { %897 = vmatprep.subr.bf16.mxu0 %v956_v24 }
  0x79   :  { %152 = vperm.xlu1 %948, %v103_v21   ;;  %149 = vperm.xlu0 %947, %v102_v22  }
  0x7b   :  { %898 = vmatpush3.bf16.msra.mxu0 %v956_v24 }
  0xdc   :  { %v114_v26 = vpop.permute.xlu1 %113  ;;  %v108_v27 = vpop.permute.xlu0 %107 }
  0xdd   :  { %vm156_vm0 = vcmp.eq.s32.totalorder %v114_v26, %v105_v28  ;;  %vm154_vm3 = vcmp.eq.s32.totalorder %v108_v27, %v105_v28 }
  0xe0   :  { %v117_v29 = vpop.permute.xlu1 %116  ;;  %v111_v30 = vpop.permute.xlu0 %110 }
  0xe1   :  { %vm157_vm1 = vcmp.eq.s32.totalorder %v117_v29, %v105_v28  ;;  %vm155_vm2 = vcmp.eq.s32.totalorder %v111_v30, %v105_v28  ;;  %v855_v30 = vld [vmem:[#allocation5 + $0x30] sm:$0xff]  }
  0xe2   :  { %vm793_vm4 = vmpackc.low %vm157_vm1, %vm156_vm0 }
  0xe3   :  { %vm791_vm5 = vmpackc.low %vm155_vm2, %vm154_vm3 }
  0xe4   :  { %899 = vmatprep.mubr.msk.bf16.mxu0 %vm791_vm5, %v1173_v31  ;;  %v123_v32 = vpop.permute.xlu1 %122  ;;  %v120_v33 = vpop.permute.xlu0 %119 }
  0xe5   :  { %vm159_vm6 = vcmp.eq.s32.totalorder %v123_v32, %v105_v28  ;;  %900 = vmatmul.mubr.msk.bf16.vlgmr.msra.gmra.mrb[0].mxu0 %vm793_vm4, %v1173_v31  ;;  %vm158_vm7 = vcmp.eq.s32.totalorder %v120_v33, %v105_v28 }
  0xe6   :  { %vm795_vm8 = vmpackc.low %vm159_vm6, %vm158_vm7 }
  0xe7   :  { %903 = vmatprep.mubr.msk.bf16.mxu0 %vm795_vm8, %v1173_v31  ;;  %vm450_vm8 = vcmask 261120  }
  0xe8   :  { %v129_v34 = vpop.permute.xlu1 %128  ;;  %v126_v35 = vpop.permute.xlu0 %125 }
  0xe9   :  { %vm161_vm9 = vcmp.eq.s32.totalorder %v129_v34, %v105_v28  ;;  %vm160_vm10 = vcmp.eq.s32.totalorder %v126_v35, %v105_v28  ;;  %v844_v35 = vunpack.c.l.bf16 %v855_v30 }
  0xea   :  { %vm797_vm11 = vmpackc.low %vm161_vm9, %vm160_vm10 }
  0xec   :  { %v135_v36 = vpop.permute.xlu1 %134  ;;  %v132_v37 = vpop.permute.xlu0 %131 }
  0xed   :  { %vm163_vm12 = vcmp.eq.s32.totalorder %v135_v36, %v105_v28  ;;  %904 = vmatmul.mubr.msk.bf16.gmra.mrb[4].mxu0 %vm797_vm11, %v1173_v31  ;;  %vm162_vm13 = vcmp.eq.s32.totalorder %v132_v37, %v105_v28  ;;  %v845_v36 = vunpack.c.h.bf16 %v855_v30 }
  0xee   :  { %vm799_vm14 = vmpackc.low %vm163_vm12, %vm162_vm13 }
  0xef   :  { %907 = vmatprep.mubr.msk.bf16.mxu0 %vm799_vm14, %v1173_v31 }
  0xf0   :  { %v141_v38 = vpop.permute.xlu1 %140  ;;  %v138_v39 = vpop.permute.xlu0 %137 }
  0xf1   :  { %vm165_vm15 = vcmp.eq.s32.totalorder %v141_v38, %v105_v28  ;;  %vm164_vm0 = vcmp.eq.s32.totalorder %v138_v39, %v105_v28 }
  0xf2   :  { %vm801_vm1 = vmpackc.low %vm165_vm15, %vm164_vm0 }
  0xf4   :  { %v147_v40 = vpop.permute.xlu1 %146  ;;  %v144_v41 = vpop.permute.xlu0 %143 }
  0xf5   :  { %vm167_vm2 = vcmp.eq.s32.totalorder %v147_v40, %v105_v28  ;;  %908 = vmatmul.mubr.msk.bf16.gmra.mrb[8].mxu0 %vm801_vm1, %v1173_v31  ;;  %vm166_vm3 = vcmp.eq.s32.totalorder %v144_v41, %v105_v28 }
  0xf6   :  { %vm803_vm4 = vmpackc.low %vm167_vm2, %vm166_vm3 }
  0xf7   :  { %911 = vmatprep.mubr.msk.bf16.mxu0 %vm803_vm4, %v1173_v31 }
  0xf8   :  { %v153_v42 = vpop.permute.xlu1 %152  ;;  %v150_v43 = vpop.permute.xlu0 %149 }
  0xf9   :  { %vm169_vm5 = vcmp.eq.s32.totalorder %v153_v42, %v105_v28  ;;  %vm168_vm6 = vcmp.eq.s32.totalorder %v150_v43, %v105_v28  ;;  %v856_v28 = vld [vmem:[#allocation5 + $0x38] sm:$0xff]  }
  0xfa   :  { %vm805_vm7 = vmpackc.low %vm169_vm5, %vm168_vm6  ;;  %v848_v32 = vunpack.c.l.bf16 %v856_v28  ;;  %v849_v33 = vunpack.c.h.bf16 %v856_v28 }
  0xfd   :  { %912 = vmatmul.mubr.msk.bf16.gmra.mrb[12].mxu0 %vm805_vm7, %v1173_v31 }
 0x1b8   :  { %v901_v50 = vpop.f32.mrb[0].mxu0 }
 0x1b9   :  { %v308_v53 = vpop.f32.mrb[1].mxu0  ;;  %v405_v55 = vadd.f32 %v901_v50, %v824_v48 }
 0x1ba   :  { %v902_v54 = vpop.f32.mrb[2].mxu0  ;;  %v403_v58 = vadd.f32 %v820_v51, %v308_v53 }
 0x1bb   :  { %v406_v56 = vadd.f32 %v902_v54, %v825_v49  ;;  %v311_v57 = vpop.f32.mrb[3].mxu0 }
 0x1bc   :  { %v404_v59 = vadd.f32 %v821_v52, %v311_v57 }
 0x1bd   :  { %v420_v61 = vpack.c.bf16 %v406_v56, %v405_v55 }
 0x1be   :  { %v419_v63 = vpack.c.bf16 %v404_v59, %v403_v58 }
 0x1c0   :  { %v905_v2 = vpop.f32.mrb[4].mxu0  ;;  %919 = vmatprep.mubr.msk.bf16.mxu1 %vm450_vm8, %v419_v63 }
 0x1c1   :  { %v324_v5 = vpop.f32.mrb[5].mxu0  ;;  %920 = vmatmul.mubr.msk.bf16.vlgmr.msra.gmra.mrb[0].mxu1 %vm450_vm8, %v420_v61  ;;  %v409_v7 = vadd.f32 %v905_v2, %v832_v0 }
 0x1c2   :  { %v906_v6 = vpop.f32.mrb[6].mxu0  ;;  %v407_v10 = vadd.f32 %v828_v3, %v324_v5 }
 0x1c3   :  { %v410_v8 = vadd.f32 %v906_v6, %v833_v1  ;;  %v327_v9 = vpop.f32.mrb[7].mxu0 }
 0x1c4   :  { %v408_v11 = vadd.f32 %v829_v4, %v327_v9 }
 0x1c5   :  { %v422_v13 = vpack.c.bf16 %v410_v8, %v409_v7 }
 0x1c6   :  { %v421_v15 = vpack.c.bf16 %v408_v11, %v407_v10 }
 0x1c8   :  { %v909_v18 = vpop.f32.mrb[8].mxu0  ;;  %923 = vmatprep.mubr.msk.bf16.mxu1 %vm450_vm8, %v421_v15 }
 0x1c9   :  { %v340_v21 = vpop.f32.mrb[9].mxu0  ;;  %924 = vmatmul.mubr.msk.bf16.gmra.mrb[4].mxu1 %vm450_vm8, %v422_v13  ;;  %v413_v23 = vadd.f32 %v909_v18, %v840_v16 }
 0x1ca   :  { %v910_v22 = vpop.f32.mrb[10].mxu0  ;;  %v411_v26 = vadd.f32 %v836_v19, %v340_v21 }
 0x1cb   :  { %v414_v24 = vadd.f32 %v910_v22, %v841_v17  ;;  %v343_v25 = vpop.f32.mrb[11].mxu0 }
 0x1cc   :  { %v412_v27 = vadd.f32 %v837_v20, %v343_v25 }
 0x1cd   :  { %v424_v29 = vpack.c.bf16 %v414_v24, %v413_v23 }
 0x1ce   :  { %v423_v31 = vpack.c.bf16 %v412_v27, %v411_v26 }
 0x1d0   :  { %v913_v34 = vpop.f32.mrb[12].mxu0  ;;  %927 = vmatprep.mubr.msk.bf16.mxu1 %vm450_vm8, %v423_v31 }
 0x1d1   :  { %v356_v37 = vpop.f32.mrb[13].mxu0  ;;  %928 = vmatmul.mubr.msk.bf16.gmra.mrb[8].mxu1 %vm450_vm8, %v424_v29  ;;  %v417_v39 = vadd.f32 %v913_v34, %v848_v32 }
 0x1d2   :  { %v914_v38 = vpop.f32.mrb[14].mxu0  ;;  %v415_v42 = vadd.f32 %v844_v35, %v356_v37 }
 0x1d3   :  { %v418_v40 = vadd.f32 %v914_v38, %v849_v33  ;;  %v359_v41 = vpop.f32.mrb[15].mxu0 }
 0x1d4   :  { %v416_v43 = vadd.f32 %v845_v36, %v359_v41 }
 0x1d5   :  { %v426_v44 = vpack.c.bf16 %v418_v40, %v417_v39 }
 0x1d6   :  { %v425_v45 = vpack.c.bf16 %v416_v43, %v415_v42 }
 0x1d8   :  { %931 = vmatprep.mubr.msk.bf16.mxu1 %vm450_vm8, %v425_v45 }
 0x1d9   :  { %932 = vmatmul.mubr.msk.bf16.gmra.mrb[12].mxu1 %vm450_vm8, %v426_v44 }
 0x294   :  { %v921_v47 = vpop.f32.mrb[0].mxu1 }
 0x295   :  { %v518_v48 = vadd.f32 %v921_v47, %v807_v46  ;;  %v509_v49 = vpop.f32.mrb[1].mxu1 }
 0x296   :  { %v922_v50 = vpop.f32.mrb[2].mxu1  ;;  %v510_v53 = vadd.f32 %v807_v46, %v509_v49 }
 0x297   :  { %576 = vmax.xlane.f32.xlu0 %v518_v48  ;;  %v512_v51 = vpop.f32.mrb[3].mxu1  ;;  %v521_v55 = vadd.f32 %v922_v50, %v807_v46 }
 0x298   :  { %v513_v52 = vadd.f32 %v807_v46, %v512_v51 }
 0x29a   :  { %574 = vmax.xlane.f32.xlu1 %v513_v52 }
 0x29b   :  { %572 = vmax.xlane.f32.xlu0 %v510_v53 }
 0x29c   :  { %v925_v54 = vpop.f32.mrb[4].mxu1 }
 0x29d   :  { %v534_v56 = vadd.f32 %v925_v54, %v807_v46  ;;  %v525_v57 = vpop.f32.mrb[5].mxu1 }
 0x29e   :  { %v926_v58 = vpop.f32.mrb[6].mxu1  ;;  %v526_v60 = vadd.f32 %v807_v46, %v525_v57 }
 0x29f   :  { %578 = vmax.xlane.f32.xlu0 %v521_v55  ;;  %584 = vmax.xlane.f32.xlu1 %v534_v56  ;;  %v528_v59 = vpop.f32.mrb[7].mxu1  ;;  %v537_v61 = vadd.f32 %v926_v58, %v807_v46 }
 0x2a0   :  { %v529_v63 = vadd.f32 %v807_v46, %v528_v59 }
 0x2a3   :  { %586 = vmax.xlane.f32.xlu0 %v537_v61  ;;  %580 = vmax.xlane.f32.xlu1 %v526_v60 }
 0x2a4   :  { %v929_v62 = vpop.f32.mrb[8].mxu1 }
 0x2a5   :  { %v550_v0 = vadd.f32 %v929_v62, %v807_v46  ;;  %v541_v1 = vpop.f32.mrb[9].mxu1 }
 0x2a6   :  { %v930_v2 = vpop.f32.mrb[10].mxu1  ;;  %v542_v4 = vadd.f32 %v807_v46, %v541_v1 }
 0x2a7   :  { %582 = vmax.xlane.f32.xlu0 %v529_v63  ;;  %592 = vmax.xlane.f32.xlu1 %v550_v0  ;;  %v544_v3 = vpop.f32.mrb[11].mxu1  ;;  %v553_v5 = vadd.f32 %v930_v2, %v807_v46 }
 0x2a8   :  { %v1285_v7 = vadd.f32 %v807_v46, %v544_v3 }
 0x2ab   :  { %594 = vmax.xlane.f32.xlu0 %v553_v5  ;;  %588 = vmax.xlane.f32.xlu1 %v542_v4 }
 0x2ac   :  { %v933_v6 = vpop.f32.mrb[12].mxu1 }
 0x2ad   :  { %v557_v8 = vpop.f32.mrb[13].mxu1  ;;  %v1293_v13 = vadd.f32 %v933_v6, %v807_v46 }
 0x2ae   :  { %v1287_v9 = vadd.f32 %v807_v46, %v557_v8  ;;  %v934_v10 = vpop.f32.mrb[14].mxu1 }
 0x2af   :  { %590 = vmax.xlane.f32.xlu0 %v1285_v7  ;;  %v560_v11 = vpop.f32.mrb[15].mxu1  ;;  %v1297_v14 = vadd.f32 %v934_v10, %v807_v46 }
 0x2b0   :  { %v1290_v12 = vadd.f32 %v807_v46, %v560_v11  ;;  %596 = vmax.xlane.f32.xlu1 %v1287_v9 }
 0x2b3   :  { %598 = vmax.xlane.f32.xlu0 %v1290_v12 }
 0x2b4   :  { %600 = vmax.xlane.f32.xlu1 %v1293_v13 }
 0x2b7   :  { %602 = vmax.xlane.f32.xlu0 %v1297_v14 }
 0x324   :  { %v577_v15 = vpop.xlane.xlu0 %576 }
 0x325   :  { %v1300_v16 = vsub.f32 %v518_v48, %v577_v15 }
 0x327   :  { %v624_v17 = vmul.f32 1.442695, %v1300_v16  ;;  %v575_v18 = vpop.xlane.xlu1 %574 }
 0x328   :  { %v573_v19 = vpop.xlane.xlu0 %572  ;;  %v1310_v26 = vsub.f32 %v513_v52, %v575_v18 }
 0x329   :  { %959 = vpow2.f32 %v624_v17  ;;  %v1303_v20 = vsub.f32 %v510_v53, %v573_v19 }
 0x32a   :  { %v622_v32 = vmul.f32 1.442695, %v1310_v26 }
 0x32b   :  { %v620_v21 = vmul.f32 1.442695, %v1303_v20 }
 0x32c   :  { %v585_v22 = vpop.xlane.xlu1 %584  ;;  %v579_v23 = vpop.xlane.xlu0 %578 }
 0x32d   :  { %961 = vpow2.f32 %v620_v21  ;;  %v1306_v24 = vsub.f32 %v534_v56, %v585_v22  ;;  %v1308_v25 = vsub.f32 %v521_v55, %v579_v23 }
 0x32f   :  { %v632_v27 = vmul.f32 1.442695, %v1306_v24  ;;  %v626_v28 = vmul.f32 1.442695, %v1308_v25 }
 0x330   :  { %v581_v29 = vpop.xlane.xlu1 %580  ;;  %v587_v30 = vpop.xlane.xlu0 %586 }
 0x331   :  { %963 = vpow2.f32 %v632_v27  ;;  %v1314_v31 = vsub.f32 %v526_v60, %v581_v29  ;;  %v1317_v33 = vsub.f32 %v537_v61, %v587_v30 }
 0x332   :  { %965 = vpow2.f32 %v626_v28 }
 0x333   :  { %v960_v34 = vpop.eup %959  ;;  %v628_v35 = vmul.f32 1.442695, %v1314_v31  ;;  %v634_v39 = vmul.f32 1.442695, %v1317_v33 }
 0x334   :  { %v593_v36 = vpop.xlane.xlu1 %592  ;;  %656 = vadd.xlane.f32.xlu1 %v960_v34  ;;  %v583_v37 = vpop.xlane.xlu0 %582 }
 0x335   :  { %967 = vpow2.f32 %v628_v35  ;;  %v1320_v38 = vsub.f32 %v550_v0, %v593_v36  ;;  %v1323_v40 = vsub.f32 %v529_v63, %v583_v37 }
 0x336   :  { %969 = vpow2.f32 %v622_v32 }
 0x337   :  { %v962_v41 = vpop.eup %961  ;;  %v640_v42 = vmul.f32 1.442695, %v1320_v38  ;;  %v630_v47 = vmul.f32 1.442695, %v1323_v40 }
 0x338   :  { %v589_v43 = vpop.xlane.xlu1 %588  ;;  %652 = vadd.xlane.f32.xlu1 %v962_v41  ;;  %v595_v44 = vpop.xlane.xlu0 %594 }
 0x339   :  { %971 = vpow2.f32 %v640_v42  ;;  %v1326_v45 = vsub.f32 %v542_v4, %v589_v43  ;;  %v1328_v46 = vsub.f32 %v553_v5, %v595_v44 }
 0x33a   :  { %973 = vpow2.f32 %v634_v39 }
 0x33b   :  { %v964_v48 = vpop.eup %963  ;;  %v636_v49 = vmul.f32 1.442695, %v1326_v45  ;;  %v642_v52 = vmul.f32 1.442695, %v1328_v46 }
 0x33c   :  { %v966_v50 = vpop.eup %965  ;;  %664 = vadd.xlane.f32.xlu1 %v964_v48  ;;  %v591_v51 = vpop.xlane.xlu0 %590 }
 0x33d   :  { %975 = vpow2.f32 %v636_v49  ;;  %658 = vadd.xlane.f32.xlu0 %v966_v50  ;;  %v1334_v53 = vsub.f32 %v1285_v7, %v591_v51  ;;  %v597_v54 = vpop.xlane.xlu1 %596 }
 0x33e   :  { %977 = vpow2.f32 %v630_v47  ;;  %v1337_v55 = vsub.f32 %v1287_v9, %v597_v54 }
 0x33f   :  { %v968_v56 = vpop.eup %967  ;;  %979 = vpow2.f32 %v642_v52  ;;  %v638_v60 = vmul.f32 1.442695, %v1334_v53 }
 0x340   :  { %v970_v57 = vpop.eup %969  ;;  %v644_v58 = vmul.f32 1.442695, %v1337_v55  ;;  %660 = vadd.xlane.f32.xlu1 %v968_v56  ;;  %v599_v59 = vpop.xlane.xlu0 %598 }
 0x341   :  { %654 = vadd.xlane.f32.xlu0 %v970_v57  ;;  %v601_v61 = vpop.xlane.xlu1 %600  ;;  %v1342_v62 = vsub.f32 %v1290_v12, %v599_v59 }
 0x342   :  { %981 = vpow2.f32 %v644_v58  ;;  %v1345_v63 = vsub.f32 %v1293_v13, %v601_v61 }
 0x343   :  { %v972_v0 = vpop.eup %971  ;;  %983 = vpow2.f32 %v638_v60  ;;  %v646_v4 = vmul.f32 1.442695, %v1342_v62 }
 0x344   :  { %v974_v1 = vpop.eup %973  ;;  %v648_v2 = vmul.f32 1.442695, %v1345_v63  ;;  %672 = vadd.xlane.f32.xlu1 %v972_v0  ;;  %v603_v3 = vpop.xlane.xlu0 %602 }
 0x345   :  { %666 = vadd.xlane.f32.xlu0 %v974_v1  ;;  %v1350_v5 = vsub.f32 %v1297_v14, %v603_v3 }
 0x346   :  { %985 = vpow2.f32 %v648_v2 }
 0x347   :  { %v976_v6 = vpop.eup %975  ;;  %987 = vpow2.f32 %v646_v4  ;;  %v650_v8 = vmul.f32 1.442695, %v1350_v5 }
 0x348   :  { %v978_v7 = vpop.eup %977  ;;  %668 = vadd.xlane.f32.xlu1 %v976_v6 }
 0x349   :  { %662 = vadd.xlane.f32.xlu0 %v978_v7  ;;  %v980_v9 = vpop.eup %979  ;;  %989 = vpow2.f32 %v650_v8 }
 0x34c   :  { %v982_v10 = vpop.eup %981 }
 0x34d   :  { %674 = vadd.xlane.f32.xlu0 %v980_v9  ;;  %676 = vadd.xlane.f32.xlu1 %v982_v10  ;;  %v984_v11 = vpop.eup %983 }
 0x350   :  { %v986_v12 = vpop.eup %985 }
 0x351   :  { %670 = vadd.xlane.f32.xlu0 %v984_v11  ;;  %680 = vadd.xlane.f32.xlu1 %v986_v12  ;;  %v988_v13 = vpop.eup %987 }
 0x353   :  { %v990_v14 = vpop.eup %989 }
 0x355   :  { %678 = vadd.xlane.f32.xlu0 %v988_v13 }
 0x359   :  { %682 = vadd.xlane.f32.xlu0 %v990_v14 }
 0x3c1   :  { %v657_v15 = vpop.xlane.xlu1 %656 }
 0x3c2   :  { %991 = vlog2.f32 %v657_v15 }
 0x3c5   :  { %v653_v17 = vpop.xlane.xlu1 %652 }
 0x3c6   :  { %993 = vlog2.f32 %v653_v17 }
 0x3c9   :  { %v665_v18 = vpop.xlane.xlu1 %664 }
 0x3ca   :  { %995 = vlog2.f32 %v665_v18  ;;  %v659_v19 = vpop.xlane.xlu0 %658 }
 0x3cb   :  { %997 = vlog2.f32 %v659_v19 }
 0x3cc   :  { %v992_v21 = vpop.eup %991 }
 0x3cd   :  { %v689_v22 = vmul.f32 0.6931472, %v992_v21  ;;  %v661_v23 = vpop.xlane.xlu1 %660 }
 0x3ce   :  { %999 = vlog2.f32 %v661_v23  ;;  %v655_v27 = vpop.xlane.xlu0 %654 }
 0x3cf   :  { %v718_v28 = vsub.f32 %v1300_v16, %v689_v22  ;;  %1001 = vlog2.f32 %v655_v27 }
 0x3d0   :  { %v994_v29 = vpop.eup %993 }
 0x3d1   :  { %734 = vst [vmem:[#allocation11 + $0x10] sm:$0xff] %v718_v28  ;;  %v685_v30 = vmul.f32 0.6931472, %v994_v29  ;;  %v673_v32 = vpop.xlane.xlu1 %672 }
 0x3d2   :  { %1003 = vlog2.f32 %v673_v32  ;;  %v667_v34 = vpop.xlane.xlu0 %666 }
 0x3d3   :  { %v716_v35 = vsub.f32 %v1303_v20, %v685_v30  ;;  %1005 = vlog2.f32 %v667_v34 }
 0x3d4   :  { %v996_v36 = vpop.eup %995 }
 0x3d5   :  { %v998_v37 = vpop.eup %997  ;;  %732 = vst [vmem:[#allocation11] sm:$0xff] %v716_v35  ;;  %v697_v39 = vmul.f32 0.6931472, %v996_v36  ;;  %v669_v41 = vpop.xlane.xlu1 %668 }
 0x3d6   :  { %v691_v42 = vmul.f32 0.6931472, %v998_v37  ;;  %1007 = vlog2.f32 %v669_v41  ;;  %v663_v43 = vpop.xlane.xlu0 %662 }
 0x3d7   :  { %v722_v16 = vsub.f32 %v1306_v24, %v697_v39  ;;  %1009 = vlog2.f32 %v663_v43 }
 0x3d8   :  { %v1000_v44 = vpop.eup %999  ;;  %v719_v47 = vsub.f32 %v1308_v25, %v691_v42 }
 0x3d9   :  { %v1002_v48 = vpop.eup %1001  ;;  %738 = vst [vmem:[#allocation11 + $0x30] sm:$0xff] %v722_v16  ;;  %v693_v49 = vmul.f32 0.6931472, %v1000_v44 }
 0x3da   :  { %735 = vst [vmem:[#allocation11 + $0x18] sm:$0xff] %v719_v47  ;;  %v687_v20 = vmul.f32 0.6931472, %v1002_v48  ;;  %v675_v50 = vpop.xlane.xlu0 %674  ;;  %v677_v51 = vpop.xlane.xlu1 %676 }
 0x3db   :  { %v720_v52 = vsub.f32 %v1314_v31, %v693_v49  ;;  %1011 = vlog2.f32 %v675_v50 }
 0x3dc   :  { %v1004_v54 = vpop.eup %1003  ;;  %v717_v56 = vsub.f32 %v1310_v26, %v687_v20  ;;  %1013 = vlog2.f32 %v677_v51 }
 0x3dd   :  { %v1006_v57 = vpop.eup %1005  ;;  %736 = vst [vmem:[#allocation11 + $0x20] sm:$0xff] %v720_v52  ;;  %v705_v24 = vmul.f32 0.6931472, %v1004_v54 }
 0x3de   :  { %733 = vst [vmem:[#allocation11 + $0x8] sm:$0xff] %v717_v56  ;;  %v699_v58 = vmul.f32 0.6931472, %v1006_v57  ;;  %v671_v25 = vpop.xlane.xlu0 %670  ;;  %v681_v59 = vpop.xlane.xlu1 %680 }
 0x3df   :  { %v726_v60 = vsub.f32 %v1320_v38, %v705_v24  ;;  %1015 = vlog2.f32 %v671_v25 }
 0x3e0   :  { %v1008_v61 = vpop.eup %1007  ;;  %v723_v0 = vsub.f32 %v1317_v33, %v699_v58  ;;  %1017 = vlog2.f32 %v681_v59 }
 0x3e1   :  { %v1010_v31 = vpop.eup %1009  ;;  %742 = vst [vmem:[#allocation11 + $0x50] sm:$0xff] %v726_v60  ;;  %v701_v1 = vmul.f32 0.6931472, %v1008_v61 }
 0x3e2   :  { %739 = vst [vmem:[#allocation11 + $0x38] sm:$0xff] %v723_v0  ;;  %v695_v26 = vmul.f32 0.6931472, %v1010_v31  ;;  %v679_v2 = vpop.xlane.xlu0 %678 }
 0x3e3   :  { %v724_v3 = vsub.f32 %v1326_v45, %v701_v1  ;;  %1019 = vlog2.f32 %v679_v2 }
 0x3e4   :  { %v721_v4 = vsub.f32 %v1323_v40, %v695_v26 }
 0x3e5   :  { %v1012_v6 = vpop.eup %1011  ;;  %740 = vst [vmem:[#allocation11 + $0x40] sm:$0xff] %v724_v3 }
 0x3e6   :  { %v1014_v7 = vpop.eup %1013  ;;  %737 = vst [vmem:[#allocation11 + $0x28] sm:$0xff] %v721_v4  ;;  %v707_v38 = vmul.f32 0.6931472, %v1012_v6  ;;  %v683_v8 = vpop.xlane.xlu0 %682 }
 0x3e7   :  { %v709_v9 = vmul.f32 0.6931472, %v1014_v7  ;;  %1021 = vlog2.f32 %v683_v8 }
 0x3e8   :  { %v727_v33 = vsub.f32 %v1328_v46, %v707_v38 }
 0x3e9   :  { %v1016_v10 = vpop.eup %1015  ;;  %v728_v11 = vsub.f32 %v1337_v55, %v709_v9 }
 0x3ea   :  { %v1018_v12 = vpop.eup %1017  ;;  %743 = vst [vmem:[#allocation11 + $0x58] sm:$0xff] %v727_v33  ;;  %v703_v13 = vmul.f32 0.6931472, %v1016_v10 }
 0x3eb   :  { %744 = vst [vmem:[#allocation11 + $0x60] sm:$0xff] %v728_v11  ;;  %v713_v45 = vmul.f32 0.6931472, %v1018_v12 }
 0x3ec   :  { %v725_v40 = vsub.f32 %v1334_v53, %v703_v13 }
 0x3ed   :  { %v1020_v14 = vpop.eup %1019  ;;  %v730_v15 = vsub.f32 %v1345_v63, %v713_v45 }
 0x3ee   :  { %741 = vst [vmem:[#allocation11 + $0x48] sm:$0xff] %v725_v40  ;;  %v711_v17 = vmul.f32 0.6931472, %v1020_v14 }
 0x3ef   :  { %746 = vst [vmem:[#allocation11 + $0x70] sm:$0xff] %v730_v15 }
 0x3f0   :  { %v729_v18 = vsub.f32 %v1342_v62, %v711_v17 }
 0x3f1   :  { %v1022_v19 = vpop.eup %1021 }
 0x3f2   :  { %745 = vst [vmem:[#allocation11 + $0x68] sm:$0xff] %v729_v18  ;;  %v715_v46 = vmul.f32 0.6931472, %v1022_v19 }
 0x3f4   :  { %v731_v55 = vsub.f32 %v1350_v5, %v715_v46 }
 0x3f6   :  { %747 = vst [vmem:[#allocation11 + $0x78] sm:$0xff] %v731_v55 }
 0x3f7   :  { %1144 = shalt.err (!%p1141_p2)
}
 0x3f8   :  { %s1145_s11 = scalar_lea.hbm %s1389_s5, 2048 }
 0x3f9   :  { %p1146_p3 = scmp.ne.s32.totalorder %s1389_s5, %s1145_s11  ;;  %p1149_p4 = scmp.lt.u32.totalorder %s1145_s11, %s1389_s5 }
 0x3fb   :  { %p1151_p5 = pnand %p1149_p4, %p1146_p3 }
 0x3fd   :  { %1154 = shalt.err (!%p1151_p5)
}
 0x3fe   :  { %759 = dma.vmem_to_hbm [thread:$0]  %s754_s29, 2048, %s1389_s5, [#allocation4], %s1168_s3, %s1168_s3, %s1169_s30  }
 0x3ff   :  { %1161 = dma.done.wait [#allocation4], 2048  }
 0x400   :  { %1162 = vsyncadd [#allocation4], 4294965248 }
 0x401   :  { %763 = vsyncpa [#allocation3], 1 }
 0x402   :  { %764 = vsyncpa [#allocation6], 1 }
 0x403   :  { %765 = vsyncpa [#allocation9], 1 }
 0x404   :  { %766 = vsyncpa [#allocation4], 1 }

</bundles_post_ra>
